<compile_context>
chip_gen: v7x
topology: tpu7x:2x2x1
jax: 0.10.0
libtpu: 0.0.40
codegen_flags: <defaults>
</compile_context>

<pallas_src>
import jax
import jax.numpy as jnp
import numpy as np
from jax.experimental import pallas as pl
from jax.experimental.pallas import tpu as pltpu


def _round_up(v: int, m: int) -> int:
    return ((v + m - 1) // m) * m


def _scone_layer_kernel(x0_ref, b1_ref, b1t_ref, b2_ref, b2t_ref,
                        w0_ref, w1_ref, w2_ref, out_ref):
    """One SCoNe layer per grid step; activation carried in the resident out block.

    x0_ref  : [Ep, Hp] f32   layer-0 input (zero-padded)
    b1_ref  : [Np, Ep] bf16  B1          b1t_ref : [Ep, Np] bf16  B1^T
    b2_ref  : [Ep, Tp] bf16  B2          b2t_ref : [Tp, Ep] bf16  B2^T
    w*_ref  : [Hp, Hp] bf16  this layer's W0 / W1 / W2 (zero-padded)
    out_ref : [Ep, Hp] f32   running activation (also the final output)
    """
    layer = pl.program_id(0)

    @pl.when(layer == 0)
    def _():
        out_ref[...] = x0_ref[...]

    x = out_ref[...]                       # f32 carry
    xb = x.astype(jnp.bfloat16)            # bf16 MXU operands, f32 accumulation

    # Lower Laplacian branch: B1^T (B1 x)
    b1x = jnp.dot(b1_ref[...], xb, preferred_element_type=jnp.float32)      # [Np,Hp]
    lower = jnp.dot(b1t_ref[...], b1x.astype(jnp.bfloat16),
                    preferred_element_type=jnp.float32)                     # [Ep,Hp]
    # Upper Laplacian branch: B2 (B2^T x)
    b2tx = jnp.dot(b2t_ref[...], xb, preferred_element_type=jnp.float32)    # [Tp,Hp]
    upper = jnp.dot(b2_ref[...], b2tx.astype(jnp.bfloat16),
                    preferred_element_type=jnp.float32)                     # [Ep,Hp]

    # Three summed weight GEMMs (no concat temp, no zero-row FLOPs).
    y = (jnp.dot(lower.astype(jnp.bfloat16), w0_ref[...],
                 preferred_element_type=jnp.float32)
         + jnp.dot(xb, w1_ref[...], preferred_element_type=jnp.float32)
         + jnp.dot(upper.astype(jnp.bfloat16), w2_ref[...],
                   preferred_element_type=jnp.float32))

    out_ref[...] = jnp.tanh(y)


def _vmem_capacity_bytes() -> int:
    try:
        return int(pltpu.get_tpu_info().vmem_capacity_bytes)
    except Exception:
        return 64 << 20  # conservative fallback (v7x per-TC VMEM)


def scone_forward(x, incidence_1, incidence_2, params):
    """Multi-layer SCoNe forward.  params: list of (W0, W1, W2) per layer."""
    E, c_in = x.shape
    N = incidence_1.shape[0]
    T = incidence_2.shape[1]
    H = params[0][0].shape[1]
    L = len(params)

    # Lane-dense padding everywhere (all exact: padded rows/cols are zero).
    Hp = _round_up(max(H, c_in), 128)
    Ep = _round_up(E, 128)
    Np = _round_up(N, 128)
    Tp = _round_up(T, 128)

    x_p = jnp.zeros((Ep, Hp), jnp.float32).at[:E, :c_in].set(x.astype(jnp.float32))

    # Incidences: entries in {-1,0,+1} -> exact in bf16 (native MXU operand dtype).
    b1_p = jnp.zeros((Np, Ep), jnp.bfloat16).at[:N, :E].set(
        incidence_1.astype(jnp.bfloat16))
    b2_p = jnp.zeros((Ep, Tp), jnp.bfloat16).at[:E, :T].set(
        incidence_2.astype(jnp.bfloat16))
    b1t_p = b1_p.T   # [Ep, Np]  pre-transposed once (no in-kernel transpose)
    b2t_p = b2_p.T   # [Tp, Ep]

    # Per-layer zero-padded weight stacks, bf16 (streamed one layer at a time).
    def pad_w(w):
        cin_l = w.shape[0]
        return jnp.zeros((Hp, Hp), jnp.float32).at[:cin_l, :H].set(
            w.astype(jnp.float32))
    w0s = jnp.stack([pad_w(p[0]) for p in params]).astype(jnp.bfloat16)  # [L,Hp,Hp]
    w1s = jnp.stack([pad_w(p[1]) for p in params]).astype(jnp.bfloat16)
    w2s = jnp.stack([pad_w(p[2]) for p in params]).astype(jnp.bfloat16)

    # Accurate resident footprint (Pallas double-buffers each spec'd block).
    block_bytes = (
        Ep * Hp * 4                              # x0
        + (Np * Ep + Ep * Np + Ep * Tp + Tp * Ep) * 2   # incidences (bf16)
        + 3 * Hp * Hp * 2                        # one layer's weights (bf16)
        + Ep * Hp * 4                            # output / carried activation
    )
    footprint = 2 * block_bytes
    budget = int(0.85 * _vmem_capacity_bytes())  # headroom for Mosaic scratch
    if footprint + (2 << 20) > budget:
        # TODO(synk): tiled-E / sparse segment-sum fallback for complexes whose
        # dense incidence footprint exceeds VMEM.
        raise ValueError(
            f"SCoNe fused kernel needs ~{footprint >> 20} MiB VMEM, "
            f"budget is {budget >> 20} MiB")
    vmem_limit = int(min(max(footprint + (4 << 20), 16 << 20), budget))

    out_p = pl.pallas_call(
        _scone_layer_kernel,
        out_shape=jax.ShapeDtypeStruct((Ep, Hp), jnp.float32),
        grid=(L,),
        in_specs=[
            pl.BlockSpec((Ep, Hp), lambda l: (0, 0)),          # x0      (resident)
            pl.BlockSpec((Np, Ep), lambda l: (0, 0)),          # B1      (resident)
            pl.BlockSpec((Ep, Np), lambda l: (0, 0)),          # B1^T    (resident)
            pl.BlockSpec((Ep, Tp), lambda l: (0, 0)),          # B2      (resident)
            pl.BlockSpec((Tp, Ep), lambda l: (0, 0)),          # B2^T    (resident)
            pl.BlockSpec((None, Hp, Hp), lambda l: (l, 0, 0)), # W0[l]   (streamed)
            pl.BlockSpec((None, Hp, Hp), lambda l: (l, 0, 0)), # W1[l]   (streamed)
            pl.BlockSpec((None, Hp, Hp), lambda l: (l, 0, 0)), # W2[l]   (streamed)
        ],
        out_specs=pl.BlockSpec((Ep, Hp), lambda l: (0, 0)),
        compiler_params=pltpu.CompilerParams(
            dimension_semantics=("arbitrary",),                # layers are sequential
            vmem_limit_bytes=vmem_limit),
    )(x_p, b1_p, b1t_p, b2_p, b2t_p, w0s, w1s, w2s)

    return out_p[:E, :H]


def xavier_uniform(key, shape, gain=1.414):
    fan_in, fan_out = shape
    bound = gain * np.sqrt(6.0 / (fan_in + fan_out))
    return jax.random.uniform(key, shape, jnp.float32, -bound, bound)


def init_scone_params(key, in_channels, hidden_channels, n_layers):
    params = []
    c_in = in_channels
    for _ in range(n_layers):
        key, k0, k1, k2 = jax.random.split(key, 4)
        params.append((
            xavier_uniform(k0, (c_in, hidden_channels)),
            xavier_uniform(k1, (c_in, hidden_channels)),
            xavier_uniform(k2, (c_in, hidden_channels)),
        ))
        c_in = hidden_channels
    return params


def scone_forward_ref(x, incidence_1, incidence_2, params):
    """Pure-jnp reference with the same operand precision as the kernel
    (bf16 operands, f32 accumulation == the native TPU MXU path)."""
    def bdot(a, b):
        return jnp.dot(a.astype(jnp.bfloat16), b.astype(jnp.bfloat16),
                       preferred_element_type=jnp.float32)
    x = x.astype(jnp.float32)
    for w0, w1, w2 in params:
        lower = bdot(incidence_1.T, bdot(incidence_1, x))
        upper = bdot(incidence_2, bdot(incidence_2.T, x))
        x = jnp.tanh(bdot(lower, w0) + bdot(x, w1) + bdot(upper, w2))
    return x


if __name__ == "__main__":
    # Small synthetic simplicial complex.
    n_nodes, n_edges, n_tris = 16, 32, 16
    in_channels, hidden_channels, n_layers = 8, 32, 3

    key = jax.random.PRNGKey(0)
    k_x, k_b1, k_b2, k_p = jax.random.split(key, 4)

    x = jax.random.normal(k_x, (n_edges, in_channels), jnp.float32)
    # Signed incidence-like matrices with entries in {-1, 0, +1}.
    incidence_1 = jnp.sign(jnp.round(
        jax.random.uniform(k_b1, (n_nodes, n_edges), jnp.float32, -1.2, 1.2)
    )).astype(jnp.float32)
    incidence_2 = jnp.sign(jnp.round(
        jax.random.uniform(k_b2, (n_edges, n_tris), jnp.float32, -1.2, 1.2)
    )).astype(jnp.float32)

    params = init_scone_params(k_p, in_channels, hidden_channels, n_layers)

    out = scone_forward(x, incidence_1, incidence_2, params)
    out = jax.block_until_ready(out)

    ref = scone_forward_ref(x, incidence_1, incidence_2, params)
    assert out.shape == (n_edges, hidden_channels)
    np.testing.assert_allclose(np.asarray(out), np.asarray(ref),
                               rtol=5e-3, atol=5e-3)

    print("KERNEL_OK")
</pallas_src>

<mosaic_0001>
module attributes {stable_mosaic.version = 11 : i64} {
  func.func @_scone_layer_kernel(%arg0: i32, %arg1: memref<128x128xf32, #tpu.memory_space<vmem>>, %arg2: memref<128x128xbf16, #tpu.memory_space<vmem>>, %arg3: memref<128x128xbf16, #tpu.memory_space<vmem>>, %arg4: memref<128x128xbf16, #tpu.memory_space<vmem>>, %arg5: memref<128x128xbf16, #tpu.memory_space<vmem>>, %arg6: memref<1x128x128xbf16, #tpu.memory_space<vmem>>, %arg7: memref<1x128x128xbf16, #tpu.memory_space<vmem>>, %arg8: memref<1x128x128xbf16, #tpu.memory_space<vmem>>, %arg9: memref<128x128xf32, #tpu.memory_space<vmem>>) attributes {dimension_semantics = [#tpu.dimension_semantics<arbitrary>], iteration_bounds = array<i64: 3>, scalar_prefetch = 0 : i64, scratch_operands = 0 : i64, tpu.core_type = #tpu.core_type<tc>, window_params = [{pipeline_mode = #tpu.pipeline_mode<synchronous>, transform_indices = @transform_0, window_bounds = array<i64: 128, 128>}, {pipeline_mode = #tpu.pipeline_mode<synchronous>, transform_indices = @transform_1, window_bounds = array<i64: 128, 128>}, {pipeline_mode = #tpu.pipeline_mode<synchronous>, transform_indices = @transform_2, window_bounds = array<i64: 128, 128>}, {pipeline_mode = #tpu.pipeline_mode<synchronous>, transform_indices = @transform_3, window_bounds = array<i64: 128, 128>}, {pipeline_mode = #tpu.pipeline_mode<synchronous>, transform_indices = @transform_4, window_bounds = array<i64: 128, 128>}, {transform_indices = @transform_5, window_bounds = array<i64: 1, 128, 128>}, {transform_indices = @transform_6, window_bounds = array<i64: 1, 128, 128>}, {transform_indices = @transform_7, window_bounds = array<i64: 1, 128, 128>}, {pipeline_mode = #tpu.pipeline_mode<synchronous>, transform_indices = @transform_8, window_bounds = array<i64: 128, 128>}]} {
    %c0_i32 = arith.constant 0 : i32
    %0 = arith.cmpi eq, %arg0, %c0_i32 : i32
    %1 = arith.extui %0 : i1 to i32
    %c0_i32_0 = arith.constant 0 : i32
    %2 = arith.cmpi ne, %1, %c0_i32_0 : i32
    scf.if %2 {
      %c0_27 = arith.constant 0 : index
      %c0_28 = arith.constant 0 : index
      %30 = vector.load %arg1[%c0_27, %c0_28] : memref<128x128xf32, #tpu.memory_space<vmem>>, vector<128x128xf32>
      %c0_29 = arith.constant 0 : index
      %c0_30 = arith.constant 0 : index
      %31 = vector.load %arg9[%c0_29, %c0_30] : memref<128x128xf32, #tpu.memory_space<vmem>>, vector<128x128xf32>
      tpu.vector_store %arg9[%c0_29, %c0_30], %30 {strides = array<i32>} : memref<128x128xf32, #tpu.memory_space<vmem>>, vector<128x128xf32>,
    } else {
    }
    %c0 = arith.constant 0 : index
    %c0_1 = arith.constant 0 : index
    %3 = vector.load %arg9[%c0, %c0_1] : memref<128x128xf32, #tpu.memory_space<vmem>>, vector<128x128xf32>
    %4 = arith.truncf %3 : vector<128x128xf32> to vector<128x128xbf16>
    %c0_2 = arith.constant 0 : index
    %c0_3 = arith.constant 0 : index
    %5 = vector.load %arg2[%c0_2, %c0_3] : memref<128x128xbf16, #tpu.memory_space<vmem>>, vector<128x128xbf16>
    %cst = arith.constant dense<0.000000e+00> : vector<128x128xf32>
    %6 = tpu.matmul %5, %4, %cst {dimension_numbers = #tpu.dot_dimension_numbers<[1], [0], [0], [1], [0, 0, 1, 1], [], []>} : vector<128x128xbf16>, vector<128x128xbf16>, vector<128x128xf32> -> vector<128x128xf32>
    %c0_4 = arith.constant 0 : index
    %c0_5 = arith.constant 0 : index
    %7 = vector.load %arg3[%c0_4, %c0_5] : memref<128x128xbf16, #tpu.memory_space<vmem>>, vector<128x128xbf16>
    %8 = arith.truncf %6 : vector<128x128xf32> to vector<128x128xbf16>
    %cst_6 = arith.constant dense<0.000000e+00> : vector<128x128xf32>
    %9 = tpu.matmul %7, %8, %cst_6 {dimension_numbers = #tpu.dot_dimension_numbers<[1], [0], [0], [1], [0, 0, 1, 1], [], []>} : vector<128x128xbf16>, vector<128x128xbf16>, vector<128x128xf32> -> vector<128x128xf32>
    %c0_7 = arith.constant 0 : index
    %c0_8 = arith.constant 0 : index
    %10 = vector.load %arg5[%c0_7, %c0_8] : memref<128x128xbf16, #tpu.memory_space<vmem>>, vector<128x128xbf16>
    %cst_9 = arith.constant dense<0.000000e+00> : vector<128x128xf32>
    %11 = tpu.matmul %10, %4, %cst_9 {dimension_numbers = #tpu.dot_dimension_numbers<[1], [0], [0], [1], [0, 0, 1, 1], [], []>} : vector<128x128xbf16>, vector<128x128xbf16>, vector<128x128xf32> -> vector<128x128xf32>
    %c0_10 = arith.constant 0 : index
    %c0_11 = arith.constant 0 : index
    %12 = vector.load %arg4[%c0_10, %c0_11] : memref<128x128xbf16, #tpu.memory_space<vmem>>, vector<128x128xbf16>
    %13 = arith.truncf %11 : vector<128x128xf32> to vector<128x128xbf16>
    %cst_12 = arith.constant dense<0.000000e+00> : vector<128x128xf32>
    %14 = tpu.matmul %12, %13, %cst_12 {dimension_numbers = #tpu.dot_dimension_numbers<[1], [0], [0], [1], [0, 0, 1, 1], [], []>} : vector<128x128xbf16>, vector<128x128xbf16>, vector<128x128xf32> -> vector<128x128xf32>
    %15 = arith.truncf %9 : vector<128x128xf32> to vector<128x128xbf16>
    %c0_13 = arith.constant 0 : index
    %c0_14 = arith.constant 0 : index
    %c0_15 = arith.constant 0 : index
    %16 = vector.load %arg6[%c0_13, %c0_14, %c0_15] : memref<1x128x128xbf16, #tpu.memory_space<vmem>>, vector<1x128x128xbf16>
    %17 = vector.shape_cast %16 : vector<1x128x128xbf16> to vector<128x128xbf16>
    %cst_16 = arith.constant dense<0.000000e+00> : vector<128x128xf32>
    %18 = tpu.matmul %15, %17, %cst_16 {dimension_numbers = #tpu.dot_dimension_numbers<[1], [0], [0], [1], [0, 0, 1, 1], [], []>} : vector<128x128xbf16>, vector<128x128xbf16>, vector<128x128xf32> -> vector<128x128xf32>
    %c0_17 = arith.constant 0 : index
    %c0_18 = arith.constant 0 : index
    %c0_19 = arith.constant 0 : index
    %19 = vector.load %arg7[%c0_17, %c0_18, %c0_19] : memref<1x128x128xbf16, #tpu.memory_space<vmem>>, vector<1x128x128xbf16>
    %20 = vector.shape_cast %19 : vector<1x128x128xbf16> to vector<128x128xbf16>
    %cst_20 = arith.constant dense<0.000000e+00> : vector<128x128xf32>
    %21 = tpu.matmul %4, %20, %cst_20 {dimension_numbers = #tpu.dot_dimension_numbers<[1], [0], [0], [1], [0, 0, 1, 1], [], []>} : vector<128x128xbf16>, vector<128x128xbf16>, vector<128x128xf32> -> vector<128x128xf32>
    %22 = arith.addf %18, %21 : vector<128x128xf32>
    %23 = arith.truncf %14 : vector<128x128xf32> to vector<128x128xbf16>
    %c0_21 = arith.constant 0 : index
    %c0_22 = arith.constant 0 : index
    %c0_23 = arith.constant 0 : index
    %24 = vector.load %arg8[%c0_21, %c0_22, %c0_23] : memref<1x128x128xbf16, #tpu.memory_space<vmem>>, vector<1x128x128xbf16>
    %25 = vector.shape_cast %24 : vector<1x128x128xbf16> to vector<128x128xbf16>
    %cst_24 = arith.constant dense<0.000000e+00> : vector<128x128xf32>
    %26 = tpu.matmul %23, %25, %cst_24 {dimension_numbers = #tpu.dot_dimension_numbers<[1], [0], [0], [1], [0, 0, 1, 1], [], []>} : vector<128x128xbf16>, vector<128x128xbf16>, vector<128x128xf32> -> vector<128x128xf32>
    %27 = arith.addf %22, %26 : vector<128x128xf32>
    %28 = math.tanh %27 : vector<128x128xf32>
    %c0_25 = arith.constant 0 : index
    %c0_26 = arith.constant 0 : index
    %29 = vector.load %arg9[%c0_25, %c0_26] : memref<128x128xf32, #tpu.memory_space<vmem>>, vector<128x128xf32>
    tpu.vector_store %arg9[%c0_25, %c0_26], %28 {strides = array<i32>} : memref<128x128xf32, #tpu.memory_space<vmem>>, vector<128x128xf32>,
    return
  }
  func.func @transform_0(%arg0: i32) -> (i32, i32) {
    %c0_i32 = arith.constant 0 : i32
    %c0_i32_0 = arith.constant 0 : i32
    %c0_i32_1 = arith.constant 0 : i32
    return %c0_i32, %c0_i32_0 : i32, i32
  }
  func.func @transform_1(%arg0: i32) -> (i32, i32) {
    %c0_i32 = arith.constant 0 : i32
    %c0_i32_0 = arith.constant 0 : i32
    %c0_i32_1 = arith.constant 0 : i32
    return %c0_i32, %c0_i32_0 : i32, i32
  }
  func.func @transform_2(%arg0: i32) -> (i32, i32) {
    %c0_i32 = arith.constant 0 : i32
    %c0_i32_0 = arith.constant 0 : i32
    %c0_i32_1 = arith.constant 0 : i32
    return %c0_i32, %c0_i32_0 : i32, i32
  }
  func.func @transform_3(%arg0: i32) -> (i32, i32) {
    %c0_i32 = arith.constant 0 : i32
    %c0_i32_0 = arith.constant 0 : i32
    %c0_i32_1 = arith.constant 0 : i32
    return %c0_i32, %c0_i32_0 : i32, i32
  }
  func.func @transform_4(%arg0: i32) -> (i32, i32) {
    %c0_i32 = arith.constant 0 : i32
    %c0_i32_0 = arith.constant 0 : i32
    %c0_i32_1 = arith.constant 0 : i32
    return %c0_i32, %c0_i32_0 : i32, i32
  }
  func.func @transform_5(%arg0: i32) -> (i32, i32, i32) {
    %c0_i32 = arith.constant 0 : i32
    %c0_i32_0 = arith.constant 0 : i32
    %c0_i32_1 = arith.constant 0 : i32
    return %arg0, %c0_i32, %c0_i32_0 : i32, i32, i32
  }
  func.func @transform_6(%arg0: i32) -> (i32, i32, i32) {
    %c0_i32 = arith.constant 0 : i32
    %c0_i32_0 = arith.constant 0 : i32
    %c0_i32_1 = arith.constant 0 : i32
    return %arg0, %c0_i32, %c0_i32_0 : i32, i32, i32
  }
  func.func @transform_7(%arg0: i32) -> (i32, i32, i32) {
    %c0_i32 = arith.constant 0 : i32
    %c0_i32_0 = arith.constant 0 : i32
    %c0_i32_1 = arith.constant 0 : i32
    return %arg0, %c0_i32, %c0_i32_0 : i32, i32, i32
  }
  func.func @transform_8(%arg0: i32) -> (i32, i32) {
    %c0_i32 = arith.constant 0 : i32
    %c0_i32_0 = arith.constant 0 : i32
    %c0_i32_1 = arith.constant 0 : i32
    return %c0_i32, %c0_i32_0 : i32, i32
  }
}

</mosaic_0001>

<bundles_post_ra>
// kernel: tpu_custom_call.1
= control target key start
LH: loop header
LB: loop body
LE: loop exit
PB: predicated region body
PF: predicated region fallthrough
CT: control target
= control target key end

     0   :  { %s3408_s0 = inlined_call_operand.hbm [shape: f32[128,128], index: 0, kind: input, shape index: {}]   ;;  %s3409_s1 = inlined_call_operand.hbm [shape: bf16[128,128], index: 1, kind: input, shape index: {}]   ;;  %s3410_s2 = inlined_call_operand.hbm [shape: bf16[128,128], index: 2, kind: input, shape index: {}]   ;;  %s3411_s3 = inlined_call_operand.hbm [shape: bf16[128,128], index: 3, kind: input, shape index: {}]   ;;  %s3412_s4 = inlined_call_operand.hbm [shape: bf16[128,128], index: 4, kind: input, shape index: {}]   ;;  %s3413_s5 = inlined_call_operand.hbm [shape: bf16[3,128,128], index: 5, kind: input, shape index: {}]   ;;  %s3414_s6 = inlined_call_operand.hbm [shape: bf16[3,128,128], index: 6, kind: input, shape index: {}]   ;;  %s3415_s7 = inlined_call_operand.hbm [shape: bf16[3,128,128], index: 7, kind: input, shape index: {}]   ;;  %s3416_s8 = inlined_call_operand.hbm [shape: f32[128,128], index: 8, kind: output, shape index: {}]  }
   0x1   :  { %3439 = sst [smem:[#allocation27_spill]] %s3409_s1 }
   0x2   :  { %3440 = sst [smem:[#allocation28_spill]] %s3411_s3 }
   0x3   :  { %3441 = sst [smem:[#allocation29_spill]] %s3413_s5 }
   0x4   :  { %3442 = sst [smem:[#allocation30_spill]] %s3416_s8 }
   0x5   :  { %13 = vsyncpa [#allocation3], 0 }
   0x6   :  { %14 = vsyncpa [#allocation6], 0 }
   0x7   :  { %15 = vsyncpa [#allocation9], 0 }
   0x8   :  { %16 = vsyncpa [#allocation12], 0 }
   0x9   :  { %18 = vsyncpa [#allocation12 + $0x1], 0 }
   0xa   :  { %19 = vsyncpa [#allocation15], 0 }
   0xb   :  { %21 = vsyncpa [#allocation15 + $0x1], 0 }
   0xc   :  { %22 = vsyncpa [#allocation4], 0  ;;  %s2929_s27 = smov 0   ;;  %s2931_s28 = smov 0  }
   0xd   :  { %s2933_s29 = smov 0   ;;  %s2935_s30 = smov 0  }
   0xe LB: > { %3443 = sst [smem:[#allocation23_spill]] %s2859_s28  ;;  %s2869_s9 = smov [#allocation5]   ;;  %s2867_s30 = sphi %s2935_s30, %s3475_s30   ;;  %s2863_s29 = sphi %s2933_s29, %s3479_s29   ;;  %s2859_s28 = sphi %s2931_s28, %s3478_s28   ;;  %s2855_s27 = sphi %s2929_s27, %s3476_s27  }
   0xf   : > { %s262_s10 = sshll.u32 %s2869_s9, 4  ;;  %s2950_s11 = sadd.s32 4294967295, %s2867_s30   ;;  %s2956_s10 = int_to_ptr.vmem [resolvable:$true] %s262_s10 }
  0x10   : > { %p1883_p0 = scmp.ge.s32.totalorder %s2867_s30, 1  ;;  %p3422_p1 = scmp.eq.s32.totalorder %s2950_s11, 0 }
  0x11   : > { %p237_p2 = scmp.lt.s32.totalorder %s2867_s30, 4  ;;  %s2870_s13 = smov [#allocation8]  }
  0x12   : > { %s288_s14 = sshll.u32 %s2870_s13, 4  ;;  %s3446_s1 = sld [smem:[#allocation27_spill]]  ;;  %s2970_s14 = int_to_ptr.vmem [resolvable:$true] %s288_s14 }
  0x13   : > { %p2958_p4 = pnand %p1883_p0, %p237_p2 }
  0x15   : > { %s3444_s12 = scalar_select %p2958_p4, 1, 0 }
  0x16   : > { %p2386_p5 = pneg %p2958_p4 }
  0x18   : > { %p2966_p6 = pnand %p2386_p5, %p3422_p1  ;;  %s2557_s18 = scalar_lea.hbm %s3446_s1, 1024 }
  0x19   : > { %p2558_p7 = scmp.ne.s32.totalorder %s3446_s1, %s2557_s18  ;;  %p2564_p11 = scmp.lt.u32.totalorder %s2557_s18, %s3446_s1 }
  0x1a   : > { %s3445_s15 = scalar_select %p2966_p6, 1, 0 }
  0x1b   : > { %p2980_p8 = pneg %p2966_p6 }
  0x1d   : > { %s3447_s21 = scalar_select %p2980_p8, 1, 0 }
  0x1e   : > { %p2560_p9 = pnand %p2980_p8, %p2558_p7 }
  0x20   : > { %p2561_p10 = pneg %p2560_p9 }
  0x22   : > { %p2566_p12 = pnand %p2564_p11, %p2561_p10 }
  0x24   : > { %2569 = shalt.err (!%p2566_p12)
}
  0x25   : > { %s2570_s24 = scalar_lea.vmem %s2956_s10, 1024  ;;  %p2578_p5 = scmp.lt.s32.totalorder %s2956_s10, %s2956_s10 }
  0x26   : > { %p2571_p13 = scmp.ne.s32.totalorder %s2956_s10, %s2570_s24  ;;  %p2579_p3 = scmp.lt.s32.totalorder %s2570_s24, %s2570_s24 }
  0x28   : > { %p2573_p0 = pnand %p2571_p13, %p2980_p8  ;;  %p2580_p7 = por %p2579_p3, %p2578_p5 }
  0x2a   : > { %p2574_p2 = pneg %p2573_p0 }
  0x2c   : > { %p2581_p9 = pnand %p2580_p7, %p2574_p2 }
  0x2e   : > { %2584 = shalt.err (!%p2581_p9)
}
  0x2f   : > { %s3418_s25 = smov 64   ;;  %s3420_s26 = smov 4  }
  0x30   : > { %2392 = dma.hbm_to_vmem [thread:$0]  (!%p2966_p6), %s3446_s1, 1024, %s2956_s10, [#allocation6], %s3418_s25, %s3418_s25, %s3420_s26  }
  0x31   : > { %s3448_s3 = sld [smem:[#allocation28_spill]] }
  0x37   : > { %s2585_s18 = scalar_lea.hbm %s3448_s3, 1024 }
  0x38   : > { %p2586_p3 = scmp.ne.s32.totalorder %s3448_s3, %s2585_s18  ;;  %p2592_p12 = scmp.lt.u32.totalorder %s2585_s18, %s3448_s3 }
  0x3a   : > { %p2588_p10 = pnand %p2586_p3, %p2980_p8 }
  0x3c   : > { %p2589_p11 = pneg %p2588_p10 }
  0x3e   : > { %p2594_p13 = pnand %p2592_p12, %p2589_p11 }
  0x40   : > { %2597 = shalt.err (!%p2594_p13)
}
  0x41   : > { %s2598_s10 = scalar_lea.vmem %s2970_s14, 1024  ;;  %p2606_p7 = scmp.lt.s32.totalorder %s2970_s14, %s2970_s14 }
  0x42   : > { %p2599_p0 = scmp.ne.s32.totalorder %s2970_s14, %s2598_s10  ;;  %p2607_p9 = scmp.lt.s32.totalorder %s2598_s10, %s2598_s10 }
  0x44   : > { %p2601_p2 = pnand %p2599_p0, %p2980_p8  ;;  %p2608_p3 = por %p2607_p9, %p2606_p7 }
  0x46   : > { %p2602_p5 = pneg %p2601_p2 }
  0x48   : > { %p2609_p10 = pnand %p2608_p3, %p2602_p5 }
  0x4a   : > { %2612 = shalt.err (!%p2609_p10)
}
  0x4b   : > { %2398 = dma.hbm_to_vmem [thread:$0]  (!%p2966_p6), %s3448_s3, 1024, %s2970_s14, [#allocation9], %s3418_s25, %s3418_s25, %s3420_s26  }
  0x4c   : > { %s3031_s13 = sadd.s32 1, %s2867_s30   ;;  %s140_s16 = sadd.s32 1, %s2863_s29 }
  0x4d   : > { %3449 = sst [smem:[#allocation24_spill]] %s3031_s13  ;;  %s137_s17 = ssub.s32 %s2867_s30, %s3031_s13 }
  0x4e   : > { %p147_p11 = scmp.ne.s32.totalorder %s2863_s29, %s2859_s28  ;;  %p138_p12 = scmp.eq.s32.totalorder %s137_s17, 0 }
  0x4f   : > { %p148_p13 = scmp.eq.s32.totalorder %s2867_s30, 0  ;;  %p153_p0 = scmp.ne.s32.totalorder %s2859_s28, %s2855_s27 }
  0x50   : > { %p2417_p2 = scmp.lt.s32.totalorder %s2867_s30, 3  ;;  %s315_s20 = sand.u32 1, %s2867_s30  }
  0x51   : > { %s3043_s18 = scalar_select %p138_p12, %s2863_s29, %s140_s16  }
  0x52   : > { %p149_p5 = por %p148_p13, %p147_p11  ;;  %p3047_p7 = por %p3422_p1, %p153_p0 }
  0x53   : > { %3450 = sst [smem:[#allocation25_spill]] %s3043_s18  ;;  %s3417_s14 = sand.u32 1, %s2863_s29  }
  0x54   : > { %s3451_s19 = scalar_select %p3047_p7, 1, 0 }
  0x55   : > { %s3055_s22 = sshll.u32 %s3417_s14, 6  ;;  %s3058_s23 = sshll.u32 %s2867_s30, 10 }
  0x56   : > { %3452 = sst [smem:[#allocation26_spill]] %s3451_s19  ;;  %s3453_s5 = sld [smem:[#allocation29_spill]] }
  0x57   : > { %s319_s9 = scalar_lea.vmem [#allocation11], %s3055_s22  ;;  %p3069_p9 = pnand %p2417_p2, %p149_p5 }
  0x58   : > { %s326_s16 = sshll.u32 %s319_s9, 4  ;;  %s2873_s30 = smov [#allocation2]   ;;  %s3067_s16 = int_to_ptr.vmem [resolvable:$true] %s326_s16 }
  0x59   : > { %s3454_s17 = scalar_select %p3069_p9, 1, 0 }
  0x5a   : > { %s3073_s14 = sshll.u32 %s2873_s30, 4  ;;  %s3075_s25 = scalar_lea.sflag [#allocation12], %s315_s20  ;;  %s250_s14 = int_to_ptr.vmem [resolvable:$true] %s3073_s14 }
  0x5b   : > { %p3081_p10 = pneg %p3069_p9 }
  0x5c   : > { %s3064_s24 = scalar_lea.hbm %s3453_s5, %s3058_s23  ;;  %s2618_s1 = scalar_lea.hbm %s3453_s5, 3072 }
  0x5d   : > { %s2613_s10 = scalar_lea.hbm %s3064_s24, 1024  ;;  %p2619_p13 = scmp.lt.u32.totalorder %s3064_s24, %s3453_s5 }
  0x5e   : > { %p2614_p3 = scmp.ne.s32.totalorder %s3064_s24, %s2613_s10  ;;  %p2620_p0 = scmp.lt.u32.totalorder %s2618_s1, %s2613_s10 }
  0x5f   : > { %s3455_s27 = scalar_select %p3081_p10, 1, 0 }
  0x60   : > { %p2616_p11 = pnand %p3081_p10, %p2614_p3  ;;  %p2621_p2 = por %p2620_p0, %p2619_p13 }
  0x61   : > { %p2622_p5 = scmp.lt.u32.totalorder %s2613_s10, %s3064_s24 }
  0x62   : > { %p2617_p12 = pneg %p2616_p11 }
  0x63   : > { %p2623_p1 = por %p2622_p5, %p2621_p2 }
  0x65   : > { %p2624_p7 = pnand %p2623_p1, %p2617_p12 }
  0x67   : > { %2627 = shalt.err (!%p2624_p7)
}
  0x68   : > { %s2628_s20 = scalar_lea.vmem %s3067_s16, 1024  ;;  %s2874_s26 = smov [#allocation11]  }
  0x69   : > { %p2629_p3 = scmp.ne.s32.totalorder %s3067_s16, %s2628_s20  ;;  %s2633_s9 = sshll.u32 %s2874_s26, 4  ;;  %s2634_s9 = int_to_ptr.vmem [resolvable:$false] %s2633_s9 }
  0x6a   : > { %s2635_s3 = scalar_lea.vmem %s2634_s9, 2048  ;;  %p2636_p6 = scmp.lt.s32.totalorder %s3067_s16, %s2634_s9 }
  0x6b   : > { %p2631_p11 = pnand %p2629_p3, %p3081_p10  ;;  %p2637_p8 = scmp.lt.s32.totalorder %s2635_s3, %s2628_s20 }
  0x6d   : > { %p2632_p4 = pneg %p2631_p11  ;;  %p2638_p13 = por %p2637_p8, %p2636_p6 }
  0x6f   : > { %p2639_p0 = pnand %p2638_p13, %p2632_p4 }
  0x71   : > { %2642 = shalt.err (!%p2639_p0)
}
  0x72   : > { %s3456_s1 = smov 4   ;;  %s3457_s10 = smov 64  }
  0x73   : > { %2405 = dma.hbm_to_vmem [thread:$0]  (!%p3069_p9), %s3064_s24, 1024, %s3067_s16, %s3075_s25, %s3457_s10, %s3457_s10, %s3456_s1  }
  0x74   : > { %s2643_s9 = scalar_lea.hbm %s3408_s0, 2048  ;;  %p3458_p4 = scmp.ne.s32.totalorder %s3447_s21, 0 }
  0x75   : > { %p2644_p1 = scmp.ne.s32.totalorder %s3408_s0, %s2643_s9  ;;  %p2650_p7 = scmp.lt.u32.totalorder %s2643_s9, %s3408_s0 }
  0x77   : > { %p2646_p6 = pnand %p2644_p1, %p3458_p4 }
  0x79   : > { %p2647_p8 = pneg %p2646_p6 }
  0x7b   : > { %p2652_p12 = pnand %p2650_p7, %p2647_p8 }
  0x7d   : > { %2655 = shalt.err (!%p2652_p12)
}
  0x7e   : > { %s2656_s13 = scalar_lea.vmem %s250_s14, 2048  ;;  %p2664_p11 = scmp.lt.s32.totalorder %s250_s14, %s250_s14 }
  0x7f   : > { %p2657_p2 = scmp.ne.s32.totalorder %s250_s14, %s2656_s13  ;;  %p2665_p13 = scmp.lt.s32.totalorder %s2656_s13, %s2656_s13 }
  0x81   : > { %p2659_p5 = pnand %p2657_p2, %p3458_p4  ;;  %p2666_p0 = por %p2665_p13, %p2664_p11 }
  0x83   : > { %p2660_p3 = pneg %p2659_p5 }
  0x85   : > { %p2667_p9 = pnand %p2666_p0, %p2660_p3 }
  0x87   : > { %2670 = shalt.err (!%p2667_p9)
}
  0x88   : > { %s2875_s24 = smov 128   ;;  %s2876_s16 = smov 8  }
  0x89   : > { %p3459_p1 = scmp.ne.s32.totalorder %s3445_s15, 0  ;;  %s2877_s30 = smov [#allocation7]  }
  0x8a   : > { %s275_s26 = sshll.u32 %s2877_s30, 4  ;;  %s2878_s9 = smov [#allocation10]   ;;  %s276_s26 = int_to_ptr.vmem [resolvable:$true] %s275_s26 }
  0x8b   : > { %2389 = dma.hbm_to_vmem [thread:$0]  (!%p3459_p1), %s3408_s0, 2048, %s250_s14, [#allocation3], %s2875_s24, %s2875_s24, %s2876_s16  }
  0x8c   : > { %s301_s20 = sshll.u32 %s2878_s9, 4  ;;  %s2671_s8 = scalar_lea.hbm %s3410_s2, 1024  ;;  %s3127_s20 = int_to_ptr.vmem [resolvable:$true] %s301_s20 }
  0x8d   : > { %p2672_p9 = scmp.ne.s32.totalorder %s3410_s2, %s2671_s8  ;;  %p2678_p7 = scmp.lt.u32.totalorder %s2671_s8, %s3410_s2 }
  0x8f   : > { %p2674_p6 = pnand %p2672_p9, %p3458_p4 }
  0x91   : > { %p2675_p8 = pneg %p2674_p6 }
  0x93   : > { %p2680_p12 = pnand %p2678_p7, %p2675_p8 }
  0x95   : > { %2683 = shalt.err (!%p2680_p12)
}
  0x96   : > { %s2684_s24 = scalar_lea.vmem %s276_s26, 1024  ;;  %p2692_p11 = scmp.lt.s32.totalorder %s276_s26, %s276_s26 }
  0x97   : > { %p2685_p2 = scmp.ne.s32.totalorder %s276_s26, %s2684_s24  ;;  %p2693_p13 = scmp.lt.s32.totalorder %s2684_s24, %s2684_s24 }
  0x99   : > { %p2687_p5 = pnand %p2685_p2, %p3458_p4  ;;  %p2694_p0 = por %p2693_p13, %p2692_p11 }
  0x9b   : > { %p2688_p3 = pneg %p2687_p5 }
  0x9d   : > { %p2695_p10 = pnand %p2694_p0, %p2688_p3 }
  0x9f   : > { %2698 = shalt.err (!%p2695_p10)
}
  0xa0   : > { %2395 = dma.hbm_to_vmem [thread:$0]  (!%p3459_p1), %s3410_s2, 1024, %s276_s26, [#allocation6], %s3457_s10, %s3457_s10, %s3456_s1  }
  0xa1   : > { %s2699_s18 = scalar_lea.hbm %s3412_s4, 1024 }
  0xa2   : > { %p2700_p9 = scmp.ne.s32.totalorder %s3412_s4, %s2699_s18  ;;  %p2706_p8 = scmp.lt.u32.totalorder %s2699_s18, %s3412_s4 }
  0xa4   : > { %p2702_p10 = pnand %p2700_p9, %p3458_p4 }
  0xa6   : > { %p2703_p6 = pneg %p2702_p10 }
  0xa8   : > { %p2708_p7 = pnand %p2706_p8, %p2703_p6 }
  0xaa   : > { %2711 = shalt.err (!%p2708_p7)
}
  0xab   : > { %s2712_s26 = scalar_lea.vmem %s3127_s20, 1024  ;;  %p2720_p3 = scmp.lt.s32.totalorder %s3127_s20, %s3127_s20 }
  0xac   : > { %p2713_p12 = scmp.ne.s32.totalorder %s3127_s20, %s2712_s26  ;;  %p2721_p11 = scmp.lt.s32.totalorder %s2712_s26, %s2712_s26 }
  0xae   : > { %p2715_p2 = pnand %p2713_p12, %p3458_p4  ;;  %p2722_p13 = por %p2721_p11, %p2720_p3 }
  0xb0   : > { %p2716_p5 = pneg %p2715_p2 }
  0xb2   : > { %p2723_p0 = pnand %p2722_p13, %p2716_p5 }
  0xb4   : > { %2726 = shalt.err (!%p2723_p0)
}
  0xb5   : > { %2401 = dma.hbm_to_vmem [thread:$0]  (!%p3459_p1), %s3412_s4, 1024, %s3127_s20, [#allocation9], %s3457_s10, %s3457_s10, %s3456_s1  }
  0xb6   : > { %s3180_s28 = scalar_lea.hbm %s3414_s6, %s3058_s23  ;;  %s340_s15 = scalar_lea.vmem [#allocation13], %s3055_s22 }
  0xb7   : > { %s347_s8 = sshll.u32 %s340_s15, 4  ;;  %s2727_s19 = scalar_lea.hbm %s3180_s28, 1024  ;;  %s3183_s8 = int_to_ptr.vmem [resolvable:$true] %s347_s8 }
  0xb8   : > { %p2728_p4 = scmp.ne.s32.totalorder %s3180_s28, %s2727_s19  ;;  %p3460_p9 = scmp.ne.s32.totalorder %s3455_s27, 0 }
  0xb9   : > { %s2732_s18 = scalar_lea.hbm %s3414_s6, 3072  ;;  %p2733_p1 = scmp.lt.u32.totalorder %s3180_s28, %s3414_s6 }
  0xba   : > { %p2730_p10 = pnand %p2728_p4, %p3460_p9  ;;  %p2734_p8 = scmp.lt.u32.totalorder %s2732_s18, %s2727_s19 }
  0xbb   : > { %p2736_p12 = scmp.lt.u32.totalorder %s2727_s19, %s3180_s28 }
  0xbc   : > { %p2731_p6 = pneg %p2730_p10  ;;  %p2735_p7 = por %p2734_p8, %p2733_p1 }
  0xbe   : > { %p2737_p2 = por %p2736_p12, %p2735_p7 }
  0xc0   : > { %p2738_p5 = pnand %p2737_p2, %p2731_p6 }
  0xc2   : > { %2741 = shalt.err (!%p2738_p5)
}
  0xc3   : > { %s2742_s13 = scalar_lea.vmem %s3183_s8, 1024  ;;  %s2879_s3 = smov [#allocation13]  }
  0xc4   : > { %p2743_p3 = scmp.ne.s32.totalorder %s3183_s8, %s2742_s13  ;;  %s2747_s26 = sshll.u32 %s2879_s3, 4  ;;  %s2748_s26 = int_to_ptr.vmem [resolvable:$false] %s2747_s26 }
  0xc5   : > { %s2749_s5 = scalar_lea.vmem %s2748_s26, 2048  ;;  %p2750_p0 = scmp.lt.s32.totalorder %s3183_s8, %s2748_s26 }
  0xc6   : > { %p2745_p11 = pnand %p2743_p3, %p3460_p9  ;;  %p2751_p4 = scmp.lt.s32.totalorder %s2749_s5, %s2742_s13 }
  0xc8   : > { %p2746_p13 = pneg %p2745_p11  ;;  %p2752_p10 = por %p2751_p4, %p2750_p0 }
  0xca   : > { %p2753_p1 = pnand %p2752_p10, %p2746_p13 }
  0xcc   : > { %2756 = shalt.err (!%p2753_p1)
}
  0xcd   : > { %p3461_p6 = scmp.ne.s32.totalorder %s3454_s17, 0  ;;  %s3214_s24 = scalar_lea.hbm %s3415_s7, %s3058_s23 }
  0xce   : > { %s361_s15 = scalar_lea.vmem [#allocation14], %s3055_s22  ;;  %s3462_s16 = sand.u32 1, %s2863_s29  }
  0xcf   : > { %2408 = dma.hbm_to_vmem [thread:$0]  (!%p3461_p6), %s3180_s28, 1024, %s3183_s8, %s3075_s25, %s3457_s10, %s3457_s10, %s3456_s1  }
  0xd0   : > { %s368_s19 = sshll.u32 %s361_s15, 4  ;;  %s3221_s20 = scalar_lea.sflag [#allocation15], %s3462_s16  ;;  %s3217_s19 = int_to_ptr.vmem [resolvable:$true] %s368_s19 }
  0xd1   : > { %s2757_s18 = scalar_lea.hbm %s3214_s24, 1024  ;;  %s2762_s23 = scalar_lea.hbm %s3415_s7, 3072 }
  0xd2   : > { %p2758_p8 = scmp.ne.s32.totalorder %s3214_s24, %s2757_s18  ;;  %p2763_p2 = scmp.lt.u32.totalorder %s3214_s24, %s3415_s7 }
  0xd3   : > { %p2764_p5 = scmp.lt.u32.totalorder %s2762_s23, %s2757_s18  ;;  %p2766_p11 = scmp.lt.u32.totalorder %s2757_s18, %s3214_s24 }
  0xd4   : > { %p2760_p7 = pnand %p2758_p8, %p3460_p9 }
  0xd5   : > { %p2765_p3 = por %p2764_p5, %p2763_p2 }
  0xd6   : > { %p2761_p12 = pneg %p2760_p7 }
  0xd7   : > { %p2767_p13 = por %p2766_p11, %p2765_p3 }
  0xd9   : > { %p2768_p0 = pnand %p2767_p13, %p2761_p12 }
  0xdb   : > { %2771 = shalt.err (!%p2768_p0)
}
  0xdc   : > { %s2772_s22 = scalar_lea.vmem %s3217_s19, 1024  ;;  %s2880_s9 = smov [#allocation14]  }
  0xdd   : > { %p2773_p4 = scmp.ne.s32.totalorder %s3217_s19, %s2772_s22  ;;  %s2777_s13 = sshll.u32 %s2880_s9, 4  ;;  %s2778_s13 = int_to_ptr.vmem [resolvable:$false] %s2777_s13 }
  0xde   : > { %s2779_s3 = scalar_lea.vmem %s2778_s13, 2048  ;;  %p2780_p8 = scmp.lt.s32.totalorder %s3217_s19, %s2778_s13 }
  0xdf   : > { %p2775_p10 = pnand %p2773_p4, %p3460_p9  ;;  %p2781_p7 = scmp.lt.s32.totalorder %s2779_s3, %s2772_s22 }
  0xe1   : > { %p2776_p1 = pneg %p2775_p10  ;;  %p2782_p2 = por %p2781_p7, %p2780_p8 }
  0xe3   : > { %p2783_p5 = pnand %p2782_p2, %p2776_p1 }
  0xe5   : > { %2786 = shalt.err (!%p2783_p5)
}
  0xe6   : > { %2411 = dma.hbm_to_vmem [thread:$0]  (!%p3461_p6), %s3214_s24, 1024, %s3217_s19, %s3221_s20, %s3457_s10, %s3457_s10, %s3456_s1  }
  0xe7   : > { %p3463_p9 = scmp.ne.s32.totalorder %s3444_s12, 0 }
  0xe8   : > { %p3464_p12 = scmp.eq.s32.totalorder (!%p3463_p9), %s2950_s11, 0 }
  0xe9   : > { %380 = sbr.rel (%p3463_p9) target bundleno = 1079 (0x437), region = 52 }
  0xf0   : > { %2830 = dma.done.wait (%p3464_p12), [#allocation3], 2048   ;;  %p3465_p3 = pmov %p3464_p12 }
  0xf2   : > { %2832 = vsyncadd (%p3465_p3), [#allocation3], 4294965248  ;;  %p3466_p11 = pmov %p3465_p3 }
  0xf3   : > { %p3467_p13 = pmov %p3465_p3 }
  0xf4   : > { %2834 = dma.done.wait (%p3466_p11), [#allocation6], 2048  }
  0xf5   : > { %2836 = vsyncadd (%p3467_p13), [#allocation6], 4294965248  ;;  %p3468_p0 = pmov %p3465_p3 }
  0xf7   : > { %2838 = dma.done.wait (%p3468_p0), [#allocation9], 2048   ;;  %p3469_p6 = pmov %p3468_p0 }
  0xf8   : > { %s3470_s12 = sld [smem:[#allocation23_spill]]  ;;  %s3471_s17 = sld [smem:[#allocation26_spill]] }
  0xf9   : > { %2840 = vsyncadd (%p3469_p6), [#allocation9], 4294965248  ;;  %s402_s27 = sand.u32 1, %s2950_s11  }
  0xfa   : > { %s403_s26 = scalar_lea.sflag [#allocation12], %s402_s27 }
  0xfe   : > { %s404_s1 = sand.u32 1, %s3470_s12   ;;  %p3472_p4 = scmp.ne.s32.totalorder %s3471_s17, 0 }
  0xff   : > { %s1905_s10 = sshll.u32 %s404_s1, 6 }
 0x100   : > { %s3264_s5 = scalar_lea.vmem [#allocation11], %s1905_s10 }
 0x101   : > { %2842 = dma.done.wait (%p3472_p4), %s403_s26, 2048  }
 0x102   : > { %2844 = vsyncadd (%p3472_p4), %s403_s26, 4294965248  ;;  %s3270_s14 = scalar_lea.vmem [#allocation13], %s1905_s10  ;;  %s421_s21 = scalar_lea.sflag [#allocation15], %s404_s1 }
 0x103   : > { %s3272_s24 = scalar_lea.vmem [#allocation14], %s1905_s10 }
 0x104   : > { %2846 = dma.done.wait (%p3472_p4), %s421_s21, 1024  }
 0x105   : > { %2848 = vsyncadd (%p3472_p4), %s421_s21, 4294966272  ;;  %p3473_p10 = scmp.ne.s32.totalorder %s2950_s11, 0 }
 0x106   : > { %v467_v0 = vld [vmem:[#allocation2] sm:$0xff] (!%p3473_p10)  ;;  %v468_v1 = vld [vmem:[#allocation2 + $0x8] sm:$0xff] (!%p3473_p10)  ;;  %v469_v2 = vld [vmem:[#allocation2 + $0x10] sm:$0xff] (!%p3473_p10) }
 0x107   : > { %466 = sbr.rel (%p3473_p10) target bundleno = 271 (0x10f), region = 88  ;;  %483 = vst [vmem:[#allocation16] sm:$0xff] (!%p3473_p10), %v467_v0  ;;  %484 = vst [vmem:[#allocation16 + $0x8] sm:$0xff] (!%p3473_p10), %v468_v1  ;;  %v470_v3 = vld [vmem:[#allocation2 + $0x18] sm:$0xff] (!%p3473_p10)  ;;  %v471_v4 = vld [vmem:[#allocation2 + $0x20] sm:$0xff] (!%p3473_p10) }
 0x108   : > { %485 = vst [vmem:[#allocation16 + $0x10] sm:$0xff] (!%p3473_p10), %v469_v2  ;;  %v472_v5 = vld [vmem:[#allocation2 + $0x28] sm:$0xff] (!%p3473_p10)  ;;  %486 = vst [vmem:[#allocation16 + $0x18] sm:$0xff] (!%p3473_p10), %v470_v3  ;;  %v473_v6 = vld [vmem:[#allocation2 + $0x30] sm:$0xff] (!%p3473_p10) }
 0x109   : > { %487 = vst [vmem:[#allocation16 + $0x20] sm:$0xff] (!%p3473_p10), %v471_v4  ;;  %488 = vst [vmem:[#allocation16 + $0x28] sm:$0xff] (!%p3473_p10), %v472_v5  ;;  %v474_v7 = vld [vmem:[#allocation2 + $0x38] sm:$0xff] (!%p3473_p10)  ;;  %v475_v8 = vld [vmem:[#allocation2 + $0x40] sm:$0xff] (!%p3473_p10) }
 0x10a   : > { %489 = vst [vmem:[#allocation16 + $0x30] sm:$0xff] (!%p3473_p10), %v473_v6  ;;  %490 = vst [vmem:[#allocation16 + $0x38] sm:$0xff] (!%p3473_p10), %v474_v7  ;;  %v476_v9 = vld [vmem:[#allocation2 + $0x48] sm:$0xff] (!%p3473_p10)  ;;  %v477_v10 = vld [vmem:[#allocation2 + $0x50] sm:$0xff] (!%p3473_p10) }
 0x10b   : > { %491 = vst [vmem:[#allocation16 + $0x40] sm:$0xff] (!%p3473_p10), %v475_v8  ;;  %v478_v11 = vld [vmem:[#allocation2 + $0x58] sm:$0xff] (!%p3473_p10)  ;;  %492 = vst [vmem:[#allocation16 + $0x48] sm:$0xff] (!%p3473_p10), %v476_v9  ;;  %v479_v12 = vld [vmem:[#allocation2 + $0x60] sm:$0xff] (!%p3473_p10) }
 0x10c   : > { %493 = vst [vmem:[#allocation16 + $0x50] sm:$0xff] (!%p3473_p10), %v477_v10  ;;  %494 = vst [vmem:[#allocation16 + $0x58] sm:$0xff] (!%p3473_p10), %v478_v11  ;;  %v480_v13 = vld [vmem:[#allocation2 + $0x68] sm:$0xff] (!%p3473_p10)  ;;  %v481_v14 = vld [vmem:[#allocation2 + $0x70] sm:$0xff] (!%p3473_p10) }
 0x10d   : > { %495 = vst [vmem:[#allocation16 + $0x60] sm:$0xff] (!%p3473_p10), %v479_v12  ;;  %496 = vst [vmem:[#allocation16 + $0x68] sm:$0xff] (!%p3473_p10), %v480_v13  ;;  %v482_v15 = vld [vmem:[#allocation2 + $0x78] sm:$0xff] (!%p3473_p10) }
 0x10e   : > { %497 = vst [vmem:[#allocation16 + $0x70] sm:$0xff] %v481_v14  ;;  %498 = vst [vmem:[#allocation16 + $0x78] sm:$0xff] %v482_v15 }
 0x10f PF: > { %v499_v16 = vld [vmem:[#allocation16] sm:$0xff]  ;;  %v500_v17 = vld [vmem:[#allocation16 + $0x8] sm:$0xff]  ;;  %v2471_v43 = vld [vmem:[#allocation5 + $0x10] sm:$0xff]   ;;  %s2881_s15 = smov [#allocation16]   ;;  %p2423_p1 = scmp.eq.s32.totalorder %s2950_s11, 2 }
 0x110   : > { %v501_v18 = vld [vmem:[#allocation16 + $0x10] sm:$0xff]  ;;  %v3280_v19 = vpack.c.bf16 %v500_v17, %v499_v16  ;;  %v502_v20 = vld [vmem:[#allocation16 + $0x18] sm:$0xff]  ;;  %v2469_v27 = vld [vmem:[#allocation5] sm:$0xff]   ;;  %s1736_s19 = sshll.u32 %s2881_s15, 4  ;;  %s1737_s19 = int_to_ptr.vmem [resolvable:$true] %s1736_s19 }
 0x111   : > { %v3282_v21 = vpack.c.bf16 %v502_v20, %v501_v18  ;;  %v503_v22 = vld [vmem:[#allocation16 + $0x20] sm:$0xff]  ;;  %v504_v23 = vld [vmem:[#allocation16 + $0x28] sm:$0xff]  ;;  %2100 = vmatprep.mubr.bf16.mxu1 %v2469_v27  ;;  %v2479_v45 = vld [vmem:[#allocation10 + $0x10] sm:$0xff]   ;;  %s2787_s16 = scalar_lea.vmem %s1737_s19, 2048  ;;  %p2794_p5 = scmp.lt.s32.totalorder %s1737_s19, %s1737_s19 }
 0x112   : > { %2084 = vmatprep.subr.bf16.mxu1 %v3280_v19  ;;  %2148 = vmatprep.subr.bf16.mxu0 %v3280_v19  ;;  %v505_v24 = vld [vmem:[#allocation16 + $0x30] sm:$0xff]  ;;  %v3289_v25 = vpack.c.bf16 %v504_v23, %v503_v22  ;;  %v506_v26 = vld [vmem:[#allocation16 + $0x38] sm:$0xff]  ;;  %v2477_v34 = vld [vmem:[#allocation10] sm:$0xff]   ;;  %p2788_p8 = scmp.ne.s32.totalorder %s1737_s19, %s2787_s16  ;;  %p2795_p9 = scmp.lt.s32.totalorder %s2787_s16, %s2787_s16 }
 0x113   : > { %2085 = vmatpush3.bf16.msra.mxu1 %v3280_v19  ;;  %2149 = vmatpush3.bf16.msra.mxu0 %v3280_v19  ;;  %v3294_v28 = vpack.c.bf16 %v506_v26, %v505_v24  ;;  %v507_v29 = vld [vmem:[#allocation16 + $0x40] sm:$0xff]  ;;  %v508_v30 = vld [vmem:[#allocation16 + $0x48] sm:$0xff]  ;;  %v2472_v46 = vld [vmem:[#allocation5 + $0x18] sm:$0xff]  }
 0x114   : > { %2086 = vmatprep.subr.bf16.mxu1 %v3282_v21  ;;  %2150 = vmatprep.subr.bf16.mxu0 %v3282_v21  ;;  %v509_v31 = vld [vmem:[#allocation16 + $0x50] sm:$0xff]  ;;  %v3300_v32 = vpack.c.bf16 %v508_v30, %v507_v29  ;;  %v510_v33 = vld [vmem:[#allocation16 + $0x58] sm:$0xff]  ;;  %v2470_v42 = vld [vmem:[#allocation5 + $0x8] sm:$0xff]   ;;  %p2789_p7 = pnand %p2788_p8, %p2423_p1  ;;  %p2796_p12 = por %p2795_p9, %p2794_p5 }
 0x115   : > { %2164 = vmatprep.mubr.bf16.mxu0 %v2477_v34  ;;  %v3306_v35 = vpack.c.bf16 %v510_v33, %v509_v31  ;;  %v511_v36 = vld [vmem:[#allocation16 + $0x60] sm:$0xff]  ;;  %v512_v37 = vld [vmem:[#allocation16 + $0x68] sm:$0xff]  ;;  %v513_v38 = vld [vmem:[#allocation16 + $0x70] sm:$0xff] }
 0x116   : > { %v3312_v39 = vpack.c.bf16 %v512_v37, %v511_v36  ;;  %v514_v40 = vld [vmem:[#allocation16 + $0x78] sm:$0xff]  ;;  %v2478_v44 = vld [vmem:[#allocation10 + $0x8] sm:$0xff]   ;;  %v2473_v47 = vld [vmem:[#allocation5 + $0x20] sm:$0xff]   ;;  %p2790_p2 = pneg %p2789_p7 }
 0x117   : > { %2087 = vmatpush3.bf16.msra.mxu1 %v3282_v21  ;;  %2151 = vmatpush3.bf16.msra.mxu0 %v3282_v21  ;;  %v3318_v41 = vpack.c.bf16 %v514_v40, %v513_v38  ;;  %v2480_v48 = vld [vmem:[#allocation10 + $0x18] sm:$0xff]   ;;  %v2481_v49 = vld [vmem:[#allocation10 + $0x20] sm:$0xff]   ;;  %v2474_v50 = vld [vmem:[#allocation5 + $0x28] sm:$0xff]  }
 0x118   : > { %2088 = vmatprep.subr.bf16.mxu1 %v3289_v25  ;;  %2152 = vmatprep.subr.bf16.mxu0 %v3289_v25  ;;  %v2475_v51 = vld [vmem:[#allocation5 + $0x30] sm:$0xff]   ;;  %v2482_v52 = vld [vmem:[#allocation10 + $0x28] sm:$0xff]   ;;  %v2476_v54 = vld [vmem:[#allocation5 + $0x38] sm:$0xff]   ;;  %p2797_p3 = pnand %p2796_p12, %p2790_p2 }
 0x119   : > { %v2483_v53 = vld [vmem:[#allocation10 + $0x30] sm:$0xff]   ;;  %v2484_v55 = vld [vmem:[#allocation10 + $0x38] sm:$0xff]   ;;  %v2485_v56 = vld [vmem:[#allocation7] sm:$0xff]  }
 0x11a   : > { %v2501_v57 = vld [vmem:[%s3270_s14] sm:$0xff]   ;;  %v2502_v58 = vld [vmem:[%s3270_s14 + $0x8] sm:$0xff]   ;;  %v2503_v59 = vld [vmem:[%s3270_s14 + $0x10] sm:$0xff]  }
 0x11b   : > { %2089 = vmatpush3.bf16.msra.mxu1 %v3289_v25  ;;  %2153 = vmatpush3.bf16.msra.mxu0 %v3289_v25  ;;  %v2504_v60 = vld [vmem:[%s3270_s14 + $0x18] sm:$0xff]   ;;  %v2505_v61 = vld [vmem:[%s3270_s14 + $0x20] sm:$0xff]   ;;  %v2506_v62 = vld [vmem:[%s3270_s14 + $0x28] sm:$0xff]  }
 0x11c   : > { %2090 = vmatprep.subr.bf16.mxu1 %v3294_v28  ;;  %2154 = vmatprep.subr.bf16.mxu0 %v3294_v28  ;;  %v2507_v63 = vld [vmem:[%s3270_s14 + $0x30] sm:$0xff]   ;;  %v2508_v0 = vld [vmem:[%s3270_s14 + $0x38] sm:$0xff]   ;;  %v2509_v1 = vld [vmem:[%s3264_s5] sm:$0xff]  }
 0x11d   : > { %v2510_v2 = vld [vmem:[%s3264_s5 + $0x8] sm:$0xff]   ;;  %v2511_v8 = vld [vmem:[%s3264_s5 + $0x10] sm:$0xff]   ;;  %v2512_v16 = vld [vmem:[%s3264_s5 + $0x18] sm:$0xff]  }
 0x11e   : > { %v2513_v22 = vld [vmem:[%s3264_s5 + $0x20] sm:$0xff]   ;;  %v2515_v37 = vld [vmem:[%s3264_s5 + $0x30] sm:$0xff]  }
 0x11f   : > { %2091 = vmatpush3.bf16.msra.mxu1 %v3294_v28  ;;  %2155 = vmatpush3.bf16.msra.mxu0 %v3294_v28 }
 0x120   : > { %2092 = vmatprep.subr.bf16.mxu1 %v3300_v32  ;;  %2156 = vmatprep.subr.bf16.mxu0 %v3300_v32 }
 0x123   : > { %2093 = vmatpush3.bf16.msra.mxu1 %v3300_v32  ;;  %2157 = vmatpush3.bf16.msra.mxu0 %v3300_v32 }
 0x124   : > { %2094 = vmatprep.subr.bf16.mxu1 %v3306_v35  ;;  %2158 = vmatprep.subr.bf16.mxu0 %v3306_v35 }
 0x127   : > { %2095 = vmatpush3.bf16.msra.mxu1 %v3306_v35  ;;  %2159 = vmatpush3.bf16.msra.mxu0 %v3306_v35 }
 0x128   : > { %2096 = vmatprep.subr.bf16.mxu1 %v3312_v39  ;;  %2160 = vmatprep.subr.bf16.mxu0 %v3312_v39 }
 0x12b   : > { %2097 = vmatpush3.bf16.msra.mxu1 %v3312_v39  ;;  %2161 = vmatpush3.bf16.msra.mxu0 %v3312_v39 }
 0x12c   : > { %2098 = vmatprep.subr.bf16.mxu1 %v3318_v41  ;;  %2162 = vmatprep.subr.bf16.mxu0 %v3318_v41 }
 0x12f   : > { %2099 = vmatpush3.bf16.msra.mxu1 %v3318_v41  ;;  %2163 = vmatpush3.bf16.msra.mxu0 %v3318_v41 }
 0x130   : > { %2212 = vmatprep.subr.bf16.mxu0 %v2501_v57 }
 0x132   : > { %2101 = vmatmul.mubr.bf16.vlgmr.msra.gmra.mrb[0].mxu1 %v2470_v42  ;;  %2165 = vmatmul.mubr.bf16.vlgmr.msra.gmra.mrb[0].mxu0 %v2478_v44 }
 0x133   : > { %2104 = vmatprep.mubr.bf16.mxu1 %v2471_v43  ;;  %2168 = vmatprep.mubr.bf16.mxu0 %v2479_v45 }
 0x134   : > { %2213 = vmatpush3.bf16.msra.mxu0 %v2501_v57  ;;  %v2486_v57 = vld [vmem:[#allocation7 + $0x8] sm:$0xff]  }
 0x135   : > { %2214 = vmatprep.subr.bf16.mxu0 %v2502_v58 }
 0x138   : > { %2215 = vmatpush3.bf16.msra.mxu0 %v2502_v58  ;;  %v2487_v58 = vld [vmem:[#allocation7 + $0x10] sm:$0xff]  }
 0x139   : > { %2216 = vmatprep.subr.bf16.mxu0 %v2503_v59 }
 0x13a   : > { %2105 = vmatmul.mubr.bf16.gmra.mrb[4].mxu1 %v2472_v46  ;;  %2169 = vmatmul.mubr.bf16.gmra.mrb[4].mxu0 %v2480_v48 }
 0x13b   : > { %2108 = vmatprep.mubr.bf16.mxu1 %v2473_v47  ;;  %2172 = vmatprep.mubr.bf16.mxu0 %v2481_v49 }
 0x13c   : > { %2217 = vmatpush3.bf16.msra.mxu0 %v2503_v59  ;;  %v2489_v59 = vld [vmem:[#allocation7 + $0x20] sm:$0xff]  }
 0x13d   : > { %2218 = vmatprep.subr.bf16.mxu0 %v2504_v60 }
 0x140   : > { %2219 = vmatpush3.bf16.msra.mxu0 %v2504_v60  ;;  %v2490_v60 = vld [vmem:[#allocation7 + $0x28] sm:$0xff]  }
 0x141   : > { %2220 = vmatprep.subr.bf16.mxu0 %v2505_v61 }
 0x142   : > { %2109 = vmatmul.mubr.bf16.gmra.mrb[8].mxu1 %v2474_v50  ;;  %2173 = vmatmul.mubr.bf16.gmra.mrb[8].mxu0 %v2482_v52 }
 0x143   : > { %2112 = vmatprep.mubr.bf16.mxu1 %v2475_v51  ;;  %2176 = vmatprep.mubr.bf16.mxu0 %v2483_v53 }
 0x144   : > { %2221 = vmatpush3.bf16.msra.mxu0 %v2505_v61  ;;  %v2491_v61 = vld [vmem:[#allocation7 + $0x30] sm:$0xff]  }
 0x145   : > { %2222 = vmatprep.subr.bf16.mxu0 %v2506_v62 }
 0x148   : > { %2223 = vmatpush3.bf16.msra.mxu0 %v2506_v62  ;;  %v2492_v62 = vld [vmem:[#allocation7 + $0x38] sm:$0xff]  }
 0x149   : > { %2224 = vmatprep.subr.bf16.mxu0 %v2507_v63 }
 0x14a   : > { %2113 = vmatmul.mubr.bf16.gmra.mrb[12].mxu1 %v2476_v54  ;;  %2177 = vmatmul.mubr.bf16.gmra.mrb[12].mxu0 %v2484_v55 }
 0x14b   : > { %2228 = vmatprep.mubr.bf16.mxu0 %v3280_v19  ;;  %2132 = vmatprep.mubr.bf16.mxu1 %v2485_v56 }
 0x14c   : > { %2225 = vmatpush3.bf16.msra.mxu0 %v2507_v63  ;;  %v2493_v63 = vld [vmem:[#allocation8] sm:$0xff]  }
 0x14d   : > { %2226 = vmatprep.subr.bf16.mxu0 %v2508_v0 }
 0x150   : > { %2227 = vmatpush3.bf16.msra.mxu0 %v2508_v0  ;;  %v2494_v0 = vld [vmem:[#allocation8 + $0x8] sm:$0xff]  }
 0x151   : > { %2244 = vmatprep.subr.bf16.mxu0 %v2509_v1 }
 0x153   : > { %2229 = vmatmul.mubr.bf16.vlgmr.msra.gmra.mrb[16].mxu0 %v3282_v21 }
 0x154   : > { %2245 = vmatpush3.bf16.msra.mxu0 %v2509_v1  ;;  %2232 = vmatprep.mubr.bf16.mxu0 %v3289_v25  ;;  %v2495_v1 = vld [vmem:[#allocation8 + $0x10] sm:$0xff]  }
 0x155   : > { %2246 = vmatprep.subr.bf16.mxu0 %v2510_v2 }
 0x158   : > { %2247 = vmatpush3.bf16.msra.mxu0 %v2510_v2  ;;  %v2496_v2 = vld [vmem:[#allocation8 + $0x18] sm:$0xff]  }
 0x159   : > { %2248 = vmatprep.subr.bf16.mxu0 %v2511_v8 }
 0x15b   : > { %2233 = vmatmul.mubr.bf16.gmra.mrb[20].mxu0 %v3294_v28  ;;  %v2514_v28 = vld [vmem:[%s3264_s5 + $0x28] sm:$0xff]  }
 0x15c   : > { %2249 = vmatpush3.bf16.msra.mxu0 %v2511_v8  ;;  %2236 = vmatprep.mubr.bf16.mxu0 %v3300_v32  ;;  %v2517_v8 = vld [vmem:[%s3272_s24] sm:$0xff]  }
 0x15d   : > { %2250 = vmatprep.subr.bf16.mxu0 %v2512_v16 }
 0x160   : > { %2251 = vmatpush3.bf16.msra.mxu0 %v2512_v16 }
 0x161   : > { %2252 = vmatprep.subr.bf16.mxu0 %v2513_v22 }
 0x163   : > { %2237 = vmatmul.mubr.bf16.gmra.mrb[24].mxu0 %v3306_v35 }
 0x164   : > { %2253 = vmatpush3.bf16.msra.mxu0 %v2513_v22  ;;  %2240 = vmatprep.mubr.bf16.mxu0 %v3312_v39 }
 0x165   : > { %2254 = vmatprep.subr.bf16.mxu0 %v2514_v28 }
 0x168   : > { %2255 = vmatpush3.bf16.msra.mxu0 %v2514_v28 }
 0x169   : > { %2256 = vmatprep.subr.bf16.mxu0 %v2515_v37 }
 0x16b   : > { %2241 = vmatmul.mubr.bf16.gmra.mrb[28].mxu0 %v3318_v41  ;;  %v2488_v41 = vld [vmem:[#allocation7 + $0x18] sm:$0xff]  }
 0x16c   : > { %2257 = vmatpush3.bf16.msra.mxu0 %v2515_v37 }
 0x205   : > { %v2102_v3 = vpop.f32.mrb[0].mxu1  ;;  %v2166_v5 = vpop.f32.mrb[0].mxu0 }
 0x206   : > { %v621_v4 = vpop.f32.mrb[1].mxu1  ;;  %v951_v7 = vpop.f32.mrb[1].mxu0 }
 0x207   : > { %v2103_v6 = vpop.f32.mrb[2].mxu1  ;;  %v2167_v11 = vpop.f32.mrb[2].mxu0 }
 0x208   : > { %v701_v9 = vpack.c.bf16 %v2103_v6, %v2102_v3  ;;  %v624_v10 = vpop.f32.mrb[3].mxu1  ;;  %v3342_v13 = vpack.c.bf16 %v2167_v11, %v2166_v5  ;;  %v954_v14 = vpop.f32.mrb[3].mxu0  ;;  %v2497_v3 = vld [vmem:[#allocation8 + $0x20] sm:$0xff]   ;;  %v2499_v5 = vld [vmem:[#allocation8 + $0x30] sm:$0xff]   ;;  %v2500_v6 = vld [vmem:[#allocation8 + $0x38] sm:$0xff]  }
 0x209   : > { %v700_v12 = vpack.c.bf16 %v624_v10, %v621_v4  ;;  %v3344_v15 = vpack.c.bf16 %v954_v14, %v951_v7  ;;  %v2498_v4 = vld [vmem:[#allocation8 + $0x28] sm:$0xff]   ;;  %v2516_v7 = vld [vmem:[%s3264_s5 + $0x38] sm:$0xff]   ;;  %v2519_v10 = vld [vmem:[%s3272_s24 + $0x10] sm:$0xff]  }
 0x20a   : > { %2258 = vmatprep.subr.bf16.mxu0 %v2516_v7  ;;  %v2520_v11 = vld [vmem:[%s3272_s24 + $0x18] sm:$0xff]   ;;  %v2523_v14 = vld [vmem:[%s3272_s24 + $0x30] sm:$0xff]  }
 0x20b   : > { %2116 = vmatprep.subr.bf16.mxu1 %v700_v12  ;;  %2259 = vmatpush3.bf16.msra.mxu0 %v2516_v7 }
 0x20c   : > { %2117 = vmatpush3.bf16.msra.mxu1 %v700_v12  ;;  %2276 = vmatprep.subr.bf16.mxu0 %v2517_v8  ;;  %v2521_v12 = vld [vmem:[%s3272_s24 + $0x20] sm:$0xff]  }
 0x20d   : > { %v2106_v17 = vpop.f32.mrb[4].mxu1  ;;  %2118 = vmatprep.subr.bf16.mxu1 %v701_v9  ;;  %v2170_v19 = vpop.f32.mrb[4].mxu0 }
 0x20e   : > { %v637_v18 = vpop.f32.mrb[5].mxu1  ;;  %v967_v21 = vpop.f32.mrb[5].mxu0 }
 0x20f   : > { %v2107_v20 = vpop.f32.mrb[6].mxu1  ;;  %v2171_v25 = vpop.f32.mrb[6].mxu0 }
 0x210   : > { %v703_v23 = vpack.c.bf16 %v2107_v20, %v2106_v17  ;;  %v640_v24 = vpop.f32.mrb[7].mxu1  ;;  %2119 = vmatpush3.bf16.msra.mxu1 %v701_v9  ;;  %v3350_v27 = vpack.c.bf16 %v2171_v25, %v2170_v19  ;;  %v970_v29 = vpop.f32.mrb[7].mxu0  ;;  %v2518_v9 = vld [vmem:[%s3272_s24 + $0x8] sm:$0xff]  }
 0x211   : > { %v702_v26 = vpack.c.bf16 %v640_v24, %v637_v18  ;;  %v1032_v30 = vpack.c.bf16 %v970_v29, %v967_v21 }
 0x213   : > { %2120 = vmatprep.subr.bf16.mxu1 %v702_v26 }
 0x214   : > { %2121 = vmatpush3.bf16.msra.mxu1 %v702_v26 }
 0x215   : > { %v2110_v31 = vpop.f32.mrb[8].mxu1  ;;  %2122 = vmatprep.subr.bf16.mxu1 %v703_v23  ;;  %v2174_v33 = vpop.f32.mrb[8].mxu0 }
 0x216   : > { %v653_v32 = vpop.f32.mrb[9].mxu1  ;;  %v983_v36 = vpop.f32.mrb[9].mxu0 }
 0x217   : > { %v2111_v34 = vpop.f32.mrb[10].mxu1  ;;  %v2175_v42 = vpop.f32.mrb[10].mxu0 }
 0x218   : > { %v705_v38 = vpack.c.bf16 %v2111_v34, %v2110_v31  ;;  %v656_v40 = vpop.f32.mrb[11].mxu1  ;;  %2123 = vmatpush3.bf16.msra.mxu1 %v703_v23  ;;  %v1035_v44 = vpack.c.bf16 %v2175_v42, %v2174_v33  ;;  %v986_v45 = vpop.f32.mrb[11].mxu0 }
 0x219   : > { %v704_v43 = vpack.c.bf16 %v656_v40, %v653_v32  ;;  %v1034_v46 = vpack.c.bf16 %v986_v45, %v983_v36 }
 0x21b   : > { %2124 = vmatprep.subr.bf16.mxu1 %v704_v43 }
 0x21c   : > { %2125 = vmatpush3.bf16.msra.mxu1 %v704_v43 }
 0x21d   : > { %v2114_v35 = vpop.f32.mrb[12].mxu1  ;;  %2126 = vmatprep.subr.bf16.mxu1 %v705_v38  ;;  %v2178_v47 = vpop.f32.mrb[12].mxu0 }
 0x21e   : > { %v669_v39 = vpop.f32.mrb[13].mxu1  ;;  %v999_v49 = vpop.f32.mrb[13].mxu0 }
 0x21f   : > { %v2115_v48 = vpop.f32.mrb[14].mxu1  ;;  %v2179_v52 = vpop.f32.mrb[14].mxu0 }
 0x220   : > { %v707_v50 = vpack.c.bf16 %v2115_v48, %v2114_v35  ;;  %v672_v51 = vpop.f32.mrb[15].mxu1  ;;  %2127 = vmatpush3.bf16.msra.mxu1 %v705_v38  ;;  %v1037_v54 = vpack.c.bf16 %v2179_v52, %v2178_v47  ;;  %v1002_v55 = vpop.f32.mrb[15].mxu0 }
 0x221   : > { %v706_v53 = vpack.c.bf16 %v672_v51, %v669_v39  ;;  %v1036_v56 = vpack.c.bf16 %v1002_v55, %v999_v49 }
 0x223   : > { %2128 = vmatprep.subr.bf16.mxu1 %v706_v53 }
 0x224   : > { %2129 = vmatpush3.bf16.msra.mxu1 %v706_v53 }
 0x225   : > { %2130 = vmatprep.subr.bf16.mxu1 %v707_v50 }
 0x228   : > { %2131 = vmatpush3.bf16.msra.mxu1 %v707_v50 }
 0x229   : > { %2180 = vmatprep.subr.bf16.mxu1 %v3344_v15 }
 0x22b   : > { %2133 = vmatmul.mubr.bf16.vlgmr.msra.gmra.mrb[16].mxu1 %v2486_v57 }
 0x22c   : > { %2181 = vmatpush3.bf16.msra.mxu1 %v3344_v15  ;;  %2136 = vmatprep.mubr.bf16.mxu1 %v2487_v58  ;;  %v2524_v15 = vld [vmem:[%s3272_s24 + $0x38] sm:$0xff]  }
 0x22d   : > { %2182 = vmatprep.subr.bf16.mxu1 %v3342_v13 }
 0x230   : > { %2183 = vmatpush3.bf16.msra.mxu1 %v3342_v13  ;;  %v2522_v13 = vld [vmem:[%s3272_s24 + $0x28] sm:$0xff]  }
 0x231   : > { %2184 = vmatprep.subr.bf16.mxu1 %v1032_v30 }
 0x233   : > { %2137 = vmatmul.mubr.bf16.gmra.mrb[20].mxu1 %v2488_v41 }
 0x234   : > { %2185 = vmatpush3.bf16.msra.mxu1 %v1032_v30  ;;  %2140 = vmatprep.mubr.bf16.mxu1 %v2489_v59 }
 0x235   : > { %2186 = vmatprep.subr.bf16.mxu1 %v3350_v27 }
 0x238   : > { %2187 = vmatpush3.bf16.msra.mxu1 %v3350_v27 }
 0x239   : > { %2188 = vmatprep.subr.bf16.mxu1 %v1034_v46 }
 0x23b   : > { %2141 = vmatmul.mubr.bf16.gmra.mrb[24].mxu1 %v2490_v60 }
 0x23c   : > { %2189 = vmatpush3.bf16.msra.mxu1 %v1034_v46  ;;  %2144 = vmatprep.mubr.bf16.mxu1 %v2491_v61 }
 0x23d   : > { %2190 = vmatprep.subr.bf16.mxu1 %v1035_v44 }
 0x240   : > { %2191 = vmatpush3.bf16.msra.mxu1 %v1035_v44 }
 0x241   : > { %2192 = vmatprep.subr.bf16.mxu1 %v1036_v56 }
 0x243   : > { %2145 = vmatmul.mubr.bf16.gmra.mrb[28].mxu1 %v2492_v62 }
 0x244   : > { %2193 = vmatpush3.bf16.msra.mxu1 %v1036_v56  ;;  %2196 = vmatprep.mubr.bf16.mxu1 %v2493_v63 }
 0x245   : > { %2194 = vmatprep.subr.bf16.mxu1 %v1037_v54 }
 0x248   : > { %2195 = vmatpush3.bf16.msra.mxu1 %v1037_v54 }
 0x249   : > { %2308 = vmatprep.subr.bf16.mxu1 %v2517_v8 }
 0x24b   : > { %2197 = vmatmul.mubr.bf16.vlgmr.msra.gmra.mrb[32].mxu1 %v2494_v0 }
 0x24c   : > { %2200 = vmatprep.mubr.bf16.mxu1 %v2495_v1  ;;  %2316 = vmatpush3.bf16.msra.mxu1 %v2517_v8 }
 0x24d   : > { %2309 = vmatprep.subr.bf16.mxu1 %v2518_v9 }
 0x250   : > { %2317 = vmatpush3.bf16.msra.mxu1 %v2518_v9 }
 0x251   : > { %2310 = vmatprep.subr.bf16.mxu1 %v2519_v10 }
 0x253   : > { %2201 = vmatmul.mubr.bf16.gmra.mrb[36].mxu1 %v2496_v2 }
 0x254   : > { %2204 = vmatprep.mubr.bf16.mxu1 %v2497_v3  ;;  %2318 = vmatpush3.bf16.msra.mxu1 %v2519_v10 }
 0x255   : > { %2311 = vmatprep.subr.bf16.mxu1 %v2520_v11 }
 0x258   : > { %2319 = vmatpush3.bf16.msra.mxu1 %v2520_v11 }
 0x259   : > { %2312 = vmatprep.subr.bf16.mxu1 %v2521_v12 }
 0x25b   : > { %2205 = vmatmul.mubr.bf16.gmra.mrb[40].mxu1 %v2498_v4 }
 0x25c   : > { %2208 = vmatprep.mubr.bf16.mxu1 %v2499_v5  ;;  %2320 = vmatpush3.bf16.msra.mxu1 %v2521_v12 }
 0x25d   : > { %2313 = vmatprep.subr.bf16.mxu1 %v2522_v13 }
 0x260   : > { %2321 = vmatpush3.bf16.msra.mxu1 %v2522_v13 }
 0x261   : > { %2314 = vmatprep.subr.bf16.mxu1 %v2523_v14 }
 0x263   : > { %2209 = vmatmul.mubr.bf16.gmra.mrb[44].mxu1 %v2500_v6 }
 0x264   : > { %2322 = vmatpush3.bf16.msra.mxu1 %v2523_v14 }
 0x265   : > { %2315 = vmatprep.subr.bf16.mxu1 %v2524_v15 }
 0x268   : > { %2323 = vmatpush3.bf16.msra.mxu1 %v2524_v15 }
 0x2fe   : > { %v2134_v16 = vpop.f32.mrb[16].mxu1 }
 0x2ff   : > { %v790_v17 = vpop.f32.mrb[17].mxu1 }
 0x300   : > { %v2135_v18 = vpop.f32.mrb[18].mxu1 }
 0x301   : > { %v1184_v19 = vpack.c.bf16 %v2135_v18, %v2134_v16  ;;  %v793_v20 = vpop.f32.mrb[19].mxu1 }
 0x302   : > { %v1183_v21 = vpack.c.bf16 %v793_v20, %v790_v17 }
 0x304   : > { %2260 = vmatprep.mubr.bf16.mxu0 %v1183_v21 }
 0x305   : > { %2261 = vmatmul.mubr.bf16.vlgmr.msra.gmra.mrb[16].mxu0 %v1184_v19 }
 0x306   : > { %v2138_v22 = vpop.f32.mrb[20].mxu1  ;;  %2277 = vmatpush3.bf16.msra.mxu0 %v2517_v8 }
 0x307   : > { %v806_v23 = vpop.f32.mrb[21].mxu1  ;;  %2278 = vmatprep.subr.bf16.mxu0 %v2518_v9 }
 0x308   : > { %v2139_v24 = vpop.f32.mrb[22].mxu1 }
 0x309   : > { %v1186_v25 = vpack.c.bf16 %v2139_v24, %v2138_v22  ;;  %v809_v26 = vpop.f32.mrb[23].mxu1 }
 0x30a   : > { %v1185_v27 = vpack.c.bf16 %v809_v26, %v806_v23  ;;  %2279 = vmatpush3.bf16.msra.mxu0 %v2518_v9 }
 0x30b   : > { %2280 = vmatprep.subr.bf16.mxu0 %v2519_v10 }
 0x30c   : > { %2264 = vmatprep.mubr.bf16.mxu0 %v1185_v27 }
 0x30d   : > { %2265 = vmatmul.mubr.bf16.gmra.mrb[20].mxu0 %v1186_v25 }
 0x30e   : > { %v2142_v29 = vpop.f32.mrb[24].mxu1  ;;  %2281 = vmatpush3.bf16.msra.mxu0 %v2519_v10 }
 0x30f   : > { %v822_v30 = vpop.f32.mrb[25].mxu1  ;;  %2282 = vmatprep.subr.bf16.mxu0 %v2520_v11 }
 0x310   : > { %v2143_v28 = vpop.f32.mrb[26].mxu1 }
 0x311   : > { %v1188_v31 = vpack.c.bf16 %v2143_v28, %v2142_v29  ;;  %v825_v32 = vpop.f32.mrb[27].mxu1 }
 0x312   : > { %v1187_v33 = vpack.c.bf16 %v825_v32, %v822_v30  ;;  %2283 = vmatpush3.bf16.msra.mxu0 %v2520_v11 }
 0x313   : > { %2284 = vmatprep.subr.bf16.mxu0 %v2521_v12 }
 0x314   : > { %2268 = vmatprep.mubr.bf16.mxu0 %v1187_v33 }
 0x315   : > { %2269 = vmatmul.mubr.bf16.gmra.mrb[24].mxu0 %v1188_v31 }
 0x316   : > { %v2146_v34 = vpop.f32.mrb[28].mxu1  ;;  %2285 = vmatpush3.bf16.msra.mxu0 %v2521_v12 }
 0x317   : > { %v838_v36 = vpop.f32.mrb[29].mxu1  ;;  %2286 = vmatprep.subr.bf16.mxu0 %v2522_v13 }
 0x318   : > { %v2147_v37 = vpop.f32.mrb[30].mxu1 }
 0x319   : > { %v1190_v38 = vpack.c.bf16 %v2147_v37, %v2146_v34  ;;  %v841_v40 = vpop.f32.mrb[31].mxu1 }
 0x31a   : > { %v1189_v42 = vpack.c.bf16 %v841_v40, %v838_v36  ;;  %2287 = vmatpush3.bf16.msra.mxu0 %v2522_v13 }
 0x31b   : > { %2288 = vmatprep.subr.bf16.mxu0 %v2523_v14 }
 0x31c   : > { %2272 = vmatprep.mubr.bf16.mxu0 %v1189_v42 }
 0x31d   : > { %2273 = vmatmul.mubr.bf16.gmra.mrb[28].mxu0 %v1190_v38 }
 0x31e   : > { %v2198_v43 = vpop.f32.mrb[32].mxu1  ;;  %2289 = vmatpush3.bf16.msra.mxu0 %v2523_v14 }
 0x31f   : > { %v1120_v44 = vpop.f32.mrb[33].mxu1  ;;  %2290 = vmatprep.subr.bf16.mxu0 %v2524_v15 }
 0x320   : > { %v2199_v45 = vpop.f32.mrb[34].mxu1 }
 0x321   : > { %v1514_v46 = vpack.c.bf16 %v2199_v45, %v2198_v43  ;;  %v1123_v35 = vpop.f32.mrb[35].mxu1 }
 0x322   : > { %v1513_v39 = vpack.c.bf16 %v1123_v35, %v1120_v44  ;;  %2291 = vmatpush3.bf16.msra.mxu0 %v2524_v15 }
 0x324   : > { %2292 = vmatprep.mubr.bf16.mxu0 %v1513_v39 }
 0x325   : > { %2293 = vmatmul.mubr.bf16.vlgmr.msra.gmra.mrb[16].mxu0 %v1514_v46 }
 0x326   : > { %v2202_v47 = vpop.f32.mrb[36].mxu1 }
 0x327   : > { %v1136_v48 = vpop.f32.mrb[37].mxu1 }
 0x328   : > { %v2203_v49 = vpop.f32.mrb[38].mxu1 }
 0x329   : > { %v1516_v50 = vpack.c.bf16 %v2203_v49, %v2202_v47  ;;  %v1139_v51 = vpop.f32.mrb[39].mxu1 }
 0x32a   : > { %v1515_v52 = vpack.c.bf16 %v1139_v51, %v1136_v48 }
 0x32c   : > { %2296 = vmatprep.mubr.bf16.mxu0 %v1515_v52 }
 0x32d   : > { %2297 = vmatmul.mubr.bf16.gmra.mrb[20].mxu0 %v1516_v50 }
 0x32e   : > { %v2206_v53 = vpop.f32.mrb[40].mxu1 }
 0x32f   : > { %v1152_v54 = vpop.f32.mrb[41].mxu1 }
 0x330   : > { %v2207_v55 = vpop.f32.mrb[42].mxu1 }
 0x331   : > { %v1518_v56 = vpack.c.bf16 %v2207_v55, %v2206_v53  ;;  %v1155_v57 = vpop.f32.mrb[43].mxu1 }
 0x332   : > { %v1517_v58 = vpack.c.bf16 %v1155_v57, %v1152_v54 }
 0x334   : > { %2300 = vmatprep.mubr.bf16.mxu1 %v1517_v58 }
 0x335   : > { %2301 = vmatmul.mubr.bf16.vlgmr.msra.gmra.mrb[48].mxu1 %v1518_v56 }
 0x336   : > { %v2210_v41 = vpop.f32.mrb[44].mxu1 }
 0x337   : > { %v1168_v59 = vpop.f32.mrb[45].mxu1 }
 0x338   : > { %v2211_v60 = vpop.f32.mrb[46].mxu1 }
 0x339   : > { %v1520_v61 = vpack.c.bf16 %v2211_v60, %v2210_v41  ;;  %v1171_v62 = vpop.f32.mrb[47].mxu1 }
 0x33a   : > { %v1519_v63 = vpack.c.bf16 %v1171_v62, %v1168_v59 }
 0x33c   : > { %2304 = vmatprep.mubr.bf16.mxu1 %v1519_v63 }
 0x33d   : > { %2305 = vmatmul.mubr.bf16.gmra.mrb[52].mxu1 %v1520_v61 }
 0x3e8   : > { %v2270_v0 = vpop.f32.mrb[24].mxu0 }
 0x3e9   : > { %v1482_v1 = vpop.f32.mrb[25].mxu0 }
 0x3ea   : > { %v2271_v2 = vpop.f32.mrb[26].mxu0 }
 0x3eb   : > { %v1485_v3 = vpop.f32.mrb[27].mxu0 }
 0x3f0   : > { %v2274_v4 = vpop.f32.mrb[28].mxu0 }
 0x3f1   : > { %v1498_v5 = vpop.f32.mrb[29].mxu0 }
 0x3f2   : > { %v2275_v6 = vpop.f32.mrb[30].mxu0 }
 0x3f3   : > { %v1501_v7 = vpop.f32.mrb[31].mxu0 }
 0x3f8   : > { %v2294_v8 = vpop.f32.mrb[16].mxu0 }
 0x3f9   : > { %2525 = vtanh.f32 %v2294_v8  ;;  %v1619_v9 = vpop.f32.mrb[17].mxu0 }
 0x3fa   : > { %2527 = vtanh.f32 %v1619_v9  ;;  %v2295_v10 = vpop.f32.mrb[18].mxu0 }
 0x3fb   : > { %2529 = vtanh.f32 %v2295_v10  ;;  %v1622_v11 = vpop.f32.mrb[19].mxu0 }
 0x3fc   : > { %2531 = vtanh.f32 %v1622_v11 }
 0x400   : > { %v2298_v12 = vpop.f32.mrb[20].mxu0 }
 0x401   : > { %2533 = vtanh.f32 %v2298_v12  ;;  %v1635_v13 = vpop.f32.mrb[21].mxu0 }
 0x402   : > { %2535 = vtanh.f32 %v1635_v13  ;;  %v2299_v14 = vpop.f32.mrb[22].mxu0 }
 0x403   : > { %v2526_v15 = vpop.eup %2525  ;;  %2537 = vtanh.f32 %v2299_v14  ;;  %v1638_v16 = vpop.f32.mrb[23].mxu0 }
 0x404   : > { %v2528_v17 = vpop.eup %2527  ;;  %1716 = vst [vmem:[#allocation16 + $0x10] sm:$0xff] %v2526_v15  ;;  %2539 = vtanh.f32 %v1638_v16 }
 0x405   : > { %v2530_v18 = vpop.eup %2529  ;;  %1714 = vst [vmem:[#allocation16] sm:$0xff] %v2528_v17 }
 0x406   : > { %v2532_v19 = vpop.eup %2531  ;;  %1717 = vst [vmem:[#allocation16 + $0x18] sm:$0xff] %v2530_v18 }
 0x407   : > { %1715 = vst [vmem:[#allocation16 + $0x8] sm:$0xff] %v2532_v19 }
 0x408   : > { %v2302_v20 = vpop.f32.mrb[48].mxu1 }
 0x409   : > { %v2324_v21 = vadd.f32 %v2302_v20, %v2270_v0  ;;  %v1651_v22 = vpop.f32.mrb[49].mxu1 }
 0x40a   : > { %v2325_v23 = vadd.f32 %v1651_v22, %v1482_v1  ;;  %v2303_v24 = vpop.f32.mrb[50].mxu1 }
 0x40b   : > { %v2534_v25 = vpop.eup %2533  ;;  %2541 = vtanh.f32 %v2324_v21  ;;  %v2326_v26 = vadd.f32 %v2303_v24, %v2271_v2  ;;  %v1654_v27 = vpop.f32.mrb[51].mxu1 }
 0x40c   : > { %v2536_v29 = vpop.eup %2535  ;;  %1720 = vst [vmem:[#allocation16 + $0x30] sm:$0xff] %v2534_v25  ;;  %2543 = vtanh.f32 %v2325_v23  ;;  %v2327_v30 = vadd.f32 %v1654_v27, %v1485_v3 }
 0x40d   : > { %v2538_v28 = vpop.eup %2537  ;;  %1718 = vst [vmem:[#allocation16 + $0x20] sm:$0xff] %v2536_v29  ;;  %2545 = vtanh.f32 %v2326_v26 }
 0x40e   : > { %v2540_v31 = vpop.eup %2539  ;;  %1721 = vst [vmem:[#allocation16 + $0x38] sm:$0xff] %v2538_v28  ;;  %2547 = vtanh.f32 %v2327_v30 }
 0x40f   : > { %1719 = vst [vmem:[#allocation16 + $0x28] sm:$0xff] %v2540_v31 }
 0x410   : > { %v2306_v32 = vpop.f32.mrb[52].mxu1 }
 0x411   : > { %v2328_v33 = vadd.f32 %v2306_v32, %v2274_v4  ;;  %v1667_v34 = vpop.f32.mrb[53].mxu1 }
 0x412   : > { %v2329_v36 = vadd.f32 %v1667_v34, %v1498_v5  ;;  %v2307_v37 = vpop.f32.mrb[54].mxu1 }
 0x413   : > { %2549 = vtanh.f32 %v2328_v33  ;;  %v2330_v38 = vadd.f32 %v2307_v37, %v2275_v6  ;;  %v1670_v40 = vpop.f32.mrb[55].mxu1 }
 0x414   : > { %2551 = vtanh.f32 %v2329_v36  ;;  %v2331_v42 = vadd.f32 %v1670_v40, %v1501_v7 }
 0x415   : > { %v2542_v43 = vpop.eup %2541  ;;  %2553 = vtanh.f32 %v2330_v38 }
 0x416   : > { %v2544_v44 = vpop.eup %2543  ;;  %1724 = vst [vmem:[#allocation16 + $0x50] sm:$0xff] %v2542_v43  ;;  %2555 = vtanh.f32 %v2331_v42 }
 0x417   : > { %v2546_v45 = vpop.eup %2545  ;;  %1722 = vst [vmem:[#allocation16 + $0x40] sm:$0xff] %v2544_v44 }
 0x418   : > { %v2548_v46 = vpop.eup %2547  ;;  %1725 = vst [vmem:[#allocation16 + $0x58] sm:$0xff] %v2546_v45 }
 0x419   : > { %1723 = vst [vmem:[#allocation16 + $0x48] sm:$0xff] %v2548_v46 }
 0x41d   : > { %v2550_v35 = vpop.eup %2549 }
 0x41e   : > { %v2552_v39 = vpop.eup %2551  ;;  %1728 = vst [vmem:[#allocation16 + $0x70] sm:$0xff] %v2550_v35 }
 0x41f   : > { %v2554_v47 = vpop.eup %2553  ;;  %1726 = vst [vmem:[#allocation16 + $0x60] sm:$0xff] %v2552_v39 }
 0x420   : > { %v2556_v48 = vpop.eup %2555  ;;  %1729 = vst [vmem:[#allocation16 + $0x78] sm:$0xff] %v2554_v47 }
 0x421   : > { %1727 = vst [vmem:[#allocation16 + $0x68] sm:$0xff] %v2556_v48 }
 0x422   : > { %2800 = shalt.err (!%p2797_p3)
}
 0x423   : > { %s3474_s25 = sld [smem:[#allocation30_spill]] }
 0x429   : > { %s2801_s28 = scalar_lea.hbm %s3474_s25, 2048 }
 0x42a   : > { %p2802_p11 = scmp.ne.s32.totalorder %s3474_s25, %s2801_s28  ;;  %p2807_p6 = scmp.lt.u32.totalorder %s2801_s28, %s3474_s25 }
 0x42c   : > { %p2803_p13 = pnand %p2802_p11, %p2423_p1 }
 0x42e   : > { %p2804_p0 = pneg %p2803_p13 }
 0x430   : > { %p2809_p4 = pnand %p2807_p6, %p2804_p0 }
 0x432   : > { %2812 = shalt.err (!%p2809_p4)
}
 0x433   : > { %s2882_s9 = smov 128   ;;  %s2883_s13 = smov 8  }
 0x434   : > { %2383 = dma.vmem_to_hbm [thread:$0]  (%p2423_p1), %s1737_s19, 2048, %s3474_s25, [#allocation4], %s2882_s9, %s2882_s9, %s2883_s13  }
 0x435   : > { %2850 = dma.done.wait (%p2423_p1), [#allocation4], 2048  }
 0x436   : > { %2852 = vsyncadd (%p2423_p1), [#allocation4], 4294965248 }
 0x437 PF: > { %s3475_s30 = sld [smem:[#allocation24_spill]]  ;;  %s3476_s27 = sld [smem:[#allocation23_spill]] }
 0x438   : > { %s3477_s17 = sld [smem:[#allocation25_spill]]  ;;  %s3478_s28 = smov %s2863_s29 }
 0x43d   : > { %p25_p10 = scmp.ge.s32.totalorder %s3475_s30, 5  }
 0x43e   : > { %s3479_s29 = smov %s3477_s17 }
 0x43f   :  { %27 = sbr.rel (!%p25_p10) target bundleno = 14 (0xe), region = 138 }
 0x446   :  { %1752 = vsyncpa [#allocation3], 1 }
 0x447   :  { %1754 = vsyncpa [#allocation3 + $0x1], 1 }
 0x448   :  { %1755 = vsyncpa [#allocation6], 1 }
 0x449   :  { %1756 = vsyncpa [#allocation9], 1 }
 0x44a   :  { %1757 = vsyncpa [#allocation12], 1 }
 0x44b   :  { %1759 = vsyncpa [#allocation12 + $0x1], 1 }
 0x44c   :  { %1760 = vsyncpa [#allocation15], 1 }
 0x44d   :  { %1762 = vsyncpa [#allocation15 + $0x1], 1 }
 0x44e   :  { %1763 = vsyncpa [#allocation4], 1 }
 0x44f   :  { %1765 = vsyncpa [#allocation4 + $0x1], 1 }

</bundles_post_ra>
